<compile_context>
chip_gen: v7x
topology: tpu7x:2x2x1
jax: 0.10.0
libtpu: 0.0.40
codegen_flags: <defaults>
</compile_context>

<pallas_src>
import jax
import jax.numpy as jnp
from jax.experimental import pallas as pl
from jax.experimental.pallas import tpu as pltpu

BN_EPS = 1e-5
COMPUTE_DTYPE = jnp.bfloat16   # MXU input dtype; accumulation stays f32.


def _fold_bn(conv_w, conv_b, gamma, beta, running_mean, running_var):
    """Fold eval-mode BatchNorm into the preceding 1x1 conv.

    conv_w: (C_out, C_in)   conv_b: (C_out,)
    Returns (w, b) ready for  w @ x  on channels-first data.
    """
    scale = gamma / jnp.sqrt(running_var + BN_EPS)      # (C_out,)
    shift = beta - running_mean * scale                 # (C_out,)
    w_eff = conv_w * scale[:, None]                     # (C_out, C_in)
    b_eff = conv_b * scale + shift                      # (C_out,)
    return w_eff, b_eff


def mscam_local_kernel(x_ref, w1_ref, b1_ref, w2_ref, b2_ref, o_ref):
    # x_ref: (nb, C, thw)  NCHW-native tile, lanes = spatial.
    # w1_ref: (Ci, C) bf16, b1_ref: (Ci, 1) f32, w2_ref: (C, Ci) bf16, b2_ref: (C, 1) f32.
    w1 = w1_ref[...]
    b1 = b1_ref[...]
    w2 = w2_ref[...]
    b2 = b2_ref[...]
    nb = x_ref.shape[0]
    # nb is a small compile-time constant; static unroll keeps each dot a clean
    # 2-D MXU matmul (no broadcasted/batched dot_general in the Mosaic lowering).
    for b in range(nb):
        x = x_ref[b].astype(COMPUTE_DTYPE)                                   # (C, thw)
        h = jnp.dot(w1, x, preferred_element_type=jnp.float32) + b1          # (Ci, thw)
        h = jnp.maximum(h, 0.0).astype(COMPUTE_DTYPE)                        # ReLU
        y = jnp.dot(w2, h, preferred_element_type=jnp.float32) + b2          # (C, thw)
        o_ref[b] = jax.nn.sigmoid(y).astype(o_ref.dtype)                     # sigmoid(xl)


def _pick_thw(hw, target=8192):
    """Spatial tile width.

    Full extent when HW <= target (legal full-dimension block, even if not a
    multiple of 128); otherwise the largest multiple of 128 <= target. The
    trailing block is clipped via pl.cdiv, so HW need not divide evenly."""
    if hw <= target:
        return hw
    return max(128, (target // 128) * 128)


def _pick_nb(n, c, thw, itemsize, hw_steps, target_bytes=512 * 1024):
    """Batch images per grid step: pad small per-step tiles up to ~target_bytes,
    but keep >= 2 grid steps (v7x megacore) whenever possible."""
    per_batch = max(c * thw * itemsize, 1)
    nb = max(1, min(n, target_bytes // per_batch))
    if hw_steps == 1 and n >= 2:
        nb = min(nb, max(1, n // 2))
    return int(nb)


def ms_cam_forward(x_nchw, params, *, thw_target=8192):
    N, C, H, W = x_nchw.shape
    HW = H * W
    itemsize = jnp.dtype(x_nchw.dtype).itemsize

    thw = _pick_thw(HW, thw_target)
    hw_steps = pl.cdiv(HW, thw)
    nb = _pick_nb(N, C, thw, itemsize, hw_steps)
    n_steps = pl.cdiv(N, nb)

    # Fold BN into the two local-path convs; cast weights to bf16 once for the MXU.
    w1, b1 = _fold_bn(params["l_conv1_w"], params["l_conv1_b"],
                      params["l_bn1_g"], params["l_bn1_b"],
                      params["l_bn1_m"], params["l_bn1_v"])
    w2, b2 = _fold_bn(params["l_conv2_w"], params["l_conv2_b"],
                      params["l_bn2_g"], params["l_bn2_b"],
                      params["l_bn2_m"], params["l_bn2_v"])
    Ci = w1.shape[0]
    w1c = w1.astype(COMPUTE_DTYPE)
    w2c = w2.astype(COMPUTE_DTYPE)
    b1c = b1.reshape(Ci, 1).astype(jnp.float32)
    b2c = b2.reshape(C, 1).astype(jnp.float32)

    # NCHW -> (N, C, H*W): pure reshape, no HBM data movement on either side.
    x_flat = x_nchw.reshape(N, C, HW)

    cost = pl.CostEstimate(
        flops=4 * N * HW * C * Ci,                       # two matmuls
        transcendentals=N * HW * C,                      # sigmoid
        bytes_accessed=2 * N * C * HW * itemsize
                       + 2 * (w1c.size + w2c.size) + 4 * (b1c.size + b2c.size),
    )

    out_flat = pl.pallas_call(
        mscam_local_kernel,
        out_shape=jax.ShapeDtypeStruct((N, C, HW), x_nchw.dtype),
        grid_spec=pltpu.PrefetchScalarGridSpec(
            num_scalar_prefetch=0,
            grid=(n_steps, hw_steps),
            in_specs=[
                pl.BlockSpec((nb, C, thw), lambda b, s: (b, 0, s)),   # x tile
                pl.BlockSpec((Ci, C), lambda b, s: (0, 0)),           # W1 (BN-folded, bf16)
                pl.BlockSpec((Ci, 1), lambda b, s: (0, 0)),           # b1 (f32)
                pl.BlockSpec((C, Ci), lambda b, s: (0, 0)),           # W2 (BN-folded, bf16)
                pl.BlockSpec((C, 1), lambda b, s: (0, 0)),            # b2 (f32)
            ],
            out_specs=pl.BlockSpec((nb, C, thw), lambda b, s: (b, 0, s)),
        ),
        compiler_params=pltpu.CompilerParams(
            dimension_semantics=("parallel", "parallel")),
        cost_estimate=cost,
    )(x_flat, w1c, b1c, w2c, b2c)

    # NOTE: the module's global_att (GAP) branch is dead code in its forward
    # (wei = sigmoid(xlg) is immediately overwritten by wei = sigmoid(xl)),
    # so it is intentionally not computed here.
    return out_flat.reshape(N, C, H, W)


def make_params(key, channels=64, r=4):
    inter = channels // r
    ks = jax.random.split(key, 4)
    scale = 0.1

    def bn_init(c):
        return (jnp.ones((c,), jnp.float32),   # gamma
                jnp.zeros((c,), jnp.float32),  # beta
                jnp.zeros((c,), jnp.float32),  # running_mean
                jnp.ones((c,), jnp.float32))   # running_var

    l_bn1_g, l_bn1_b, l_bn1_m, l_bn1_v = bn_init(inter)
    l_bn2_g, l_bn2_b, l_bn2_m, l_bn2_v = bn_init(channels)
    g_bn1_g, g_bn1_b, g_bn1_m, g_bn1_v = bn_init(inter)
    g_bn2_g, g_bn2_b, g_bn2_m, g_bn2_v = bn_init(channels)

    return dict(
        # local path (the only path that affects the module's output)
        l_conv1_w=scale * jax.random.normal(ks[0], (inter, channels), jnp.float32),
        l_conv1_b=jnp.zeros((inter,), jnp.float32),
        l_bn1_g=l_bn1_g, l_bn1_b=l_bn1_b, l_bn1_m=l_bn1_m, l_bn1_v=l_bn1_v,
        l_conv2_w=scale * jax.random.normal(ks[1], (channels, inter), jnp.float32),
        l_conv2_b=jnp.zeros((channels,), jnp.float32),
        l_bn2_g=l_bn2_g, l_bn2_b=l_bn2_b, l_bn2_m=l_bn2_m, l_bn2_v=l_bn2_v,
        # global path parameters exist in the module but are dead in its forward.
        g_conv1_w=scale * jax.random.normal(ks[2], (inter, channels), jnp.float32),
        g_conv1_b=jnp.zeros((inter,), jnp.float32),
        g_bn1_g=g_bn1_g, g_bn1_b=g_bn1_b, g_bn1_m=g_bn1_m, g_bn1_v=g_bn1_v,
        g_conv2_w=scale * jax.random.normal(ks[3], (channels, inter), jnp.float32),
        g_conv2_b=jnp.zeros((channels,), jnp.float32),
        g_bn2_g=g_bn2_g, g_bn2_b=g_bn2_b, g_bn2_m=g_bn2_m, g_bn2_v=g_bn2_v,
    )


if __name__ == "__main__":
    key = jax.random.PRNGKey(0)
    k_x, k_p = jax.random.split(key)

    # Module defaults: channels=64, r=4. Small spatial (H=W=16 -> HW=256 lanes).
    N, C, H, W, r = 2, 64, 16, 16, 4
    x = jax.random.normal(k_x, (N, C, H, W), jnp.float32)
    params = make_params(k_p, channels=C, r=r)

    out = ms_cam_forward(x, params)
    out = jax.block_until_ready(out)

    # Plain-JAX f32 reference of sigmoid(local_att(x)) in NCHW.
    w1, b1 = _fold_bn(params["l_conv1_w"], params["l_conv1_b"],
                      params["l_bn1_g"], params["l_bn1_b"],
                      params["l_bn1_m"], params["l_bn1_v"])
    w2, b2 = _fold_bn(params["l_conv2_w"], params["l_conv2_b"],
                      params["l_bn2_g"], params["l_bn2_b"],
                      params["l_bn2_m"], params["l_bn2_v"])
    xf = x.reshape(N, C, H * W)
    h_ref = jnp.maximum(jnp.einsum("ic,ncs->nis", w1, xf) + b1[None, :, None], 0.0)
    ref = jax.nn.sigmoid(jnp.einsum("ci,nis->ncs", w2, h_ref) + b2[None, :, None])
    ref = ref.reshape(N, C, H, W)

    assert out.shape == (N, C, H, W)
    # bf16 MXU inputs (f32 accumulation) vs f32 reference -> loosened tolerance.
    assert jnp.max(jnp.abs(out - ref)) < 2e-2

    print("KERNEL_OK")
</pallas_src>

<mosaic_0001>
module attributes {stable_mosaic.version = 11 : i64} {
  func.func @mscam_local_kernel(%arg0: i32, %arg1: i32, %arg2: memref<1x64x256xf32, #tpu.memory_space<vmem>>, %arg3: memref<16x64xbf16, #tpu.memory_space<vmem>>, %arg4: memref<16x1xf32, #tpu.memory_space<vmem>>, %arg5: memref<64x16xbf16, #tpu.memory_space<vmem>>, %arg6: memref<64x1xf32, #tpu.memory_space<vmem>>, %arg7: memref<1x64x256xf32, #tpu.memory_space<vmem>>) attributes {dimension_semantics = [#tpu.dimension_semantics<parallel>, #tpu.dimension_semantics<parallel>], iteration_bounds = array<i64: 2, 1>, scalar_prefetch = 0 : i64, scratch_operands = 0 : i64, tpu.core_type = #tpu.core_type<tc>, window_params = [{transform_indices = @transform_0, window_bounds = array<i64: 1, 64, 256>}, {pipeline_mode = #tpu.pipeline_mode<synchronous>, transform_indices = @transform_1, window_bounds = array<i64: 16, 64>}, {pipeline_mode = #tpu.pipeline_mode<synchronous>, transform_indices = @transform_2, window_bounds = array<i64: 16, 1>}, {pipeline_mode = #tpu.pipeline_mode<synchronous>, transform_indices = @transform_3, window_bounds = array<i64: 64, 16>}, {pipeline_mode = #tpu.pipeline_mode<synchronous>, transform_indices = @transform_4, window_bounds = array<i64: 64, 1>}, {transform_indices = @transform_5, window_bounds = array<i64: 1, 64, 256>}]} {
    %c0 = arith.constant 0 : index
    %c0_0 = arith.constant 0 : index
    %0 = vector.load %arg3[%c0, %c0_0] : memref<16x64xbf16, #tpu.memory_space<vmem>>, vector<16x64xbf16>
    %c0_1 = arith.constant 0 : index
    %c0_2 = arith.constant 0 : index
    %1 = vector.load %arg4[%c0_1, %c0_2] : memref<16x1xf32, #tpu.memory_space<vmem>>, vector<16x1xf32>
    %c0_3 = arith.constant 0 : index
    %c0_4 = arith.constant 0 : index
    %2 = vector.load %arg5[%c0_3, %c0_4] : memref<64x16xbf16, #tpu.memory_space<vmem>>, vector<64x16xbf16>
    %c0_5 = arith.constant 0 : index
    %c0_6 = arith.constant 0 : index
    %3 = vector.load %arg6[%c0_5, %c0_6] : memref<64x1xf32, #tpu.memory_space<vmem>>, vector<64x1xf32>
    %c0_7 = arith.constant 0 : index
    %c0_8 = arith.constant 0 : index
    %c0_9 = arith.constant 0 : index
    %4 = vector.load %arg2[%c0_7, %c0_8, %c0_9] : memref<1x64x256xf32, #tpu.memory_space<vmem>>, vector<1x64x256xf32>
    %5 = vector.shape_cast %4 : vector<1x64x256xf32> to vector<64x256xf32>
    %6 = arith.truncf %5 : vector<64x256xf32> to vector<64x256xbf16>
    %cst = arith.constant dense<0.000000e+00> : vector<16x256xf32>
    %7 = tpu.matmul %0, %6, %cst {dimension_numbers = #tpu.dot_dimension_numbers<[1], [0], [0], [1], [0, 0, 1, 1], [], []>} : vector<16x64xbf16>, vector<64x256xbf16>, vector<16x256xf32> -> vector<16x256xf32>
    %8 = vector.broadcast %1 : vector<16x1xf32> to vector<16x256xf32>
    %9 = arith.addf %7, %8 : vector<16x256xf32>
    %cst_10 = arith.constant 0.000000e+00 : f32
    %10 = vector.broadcast %cst_10 : f32 to vector<16x256xf32>
    %11 = arith.maximumf %9, %10 : vector<16x256xf32>
    %12 = arith.truncf %11 : vector<16x256xf32> to vector<16x256xbf16>
    %cst_11 = arith.constant dense<0.000000e+00> : vector<64x256xf32>
    %13 = tpu.matmul %2, %12, %cst_11 {dimension_numbers = #tpu.dot_dimension_numbers<[1], [0], [0], [1], [0, 0, 1, 1], [], []>} : vector<64x16xbf16>, vector<16x256xbf16>, vector<64x256xf32> -> vector<64x256xf32>
    %14 = vector.broadcast %3 : vector<64x1xf32> to vector<64x256xf32>
    %15 = arith.addf %13, %14 : vector<64x256xf32>
    %16 = arith.negf %15 : vector<64x256xf32>
    %17 = math.exp %16 : vector<64x256xf32>
    %cst_12 = arith.constant 1.000000e+00 : f32
    %18 = vector.broadcast %cst_12 : f32 to vector<64x256xf32>
    %19 = arith.addf %18, %17 : vector<64x256xf32>
    %20 = arith.divf %18, %19 : vector<64x256xf32>
    %c0_13 = arith.constant 0 : index
    %c0_14 = arith.constant 0 : index
    %c0_15 = arith.constant 0 : index
    %21 = vector.load %arg7[%c0_13, %c0_14, %c0_15] : memref<1x64x256xf32, #tpu.memory_space<vmem>>, vector<1x64x256xf32>
    %22 = vector.shape_cast %21 : vector<1x64x256xf32> to vector<64x256xf32>
    %23 = vector.shape_cast %20 : vector<64x256xf32> to vector<1x64x256xf32>
    tpu.vector_store %arg7[%c0_13, %c0_14, %c0_15], %23 {strides = array<i32>} : memref<1x64x256xf32, #tpu.memory_space<vmem>>, vector<1x64x256xf32>,
    return
  }
  func.func @transform_0(%arg0: i32, %arg1: i32) -> (i32, i32, i32) {
    %c0_i32 = arith.constant 0 : i32
    %c0_i32_0 = arith.constant 0 : i32
    return %arg0, %c0_i32, %arg1 : i32, i32, i32
  }
  func.func @transform_1(%arg0: i32, %arg1: i32) -> (i32, i32) {
    %c0_i32 = arith.constant 0 : i32
    %c0_i32_0 = arith.constant 0 : i32
    %c0_i32_1 = arith.constant 0 : i32
    return %c0_i32, %c0_i32_0 : i32, i32
  }
  func.func @transform_2(%arg0: i32, %arg1: i32) -> (i32, i32) {
    %c0_i32 = arith.constant 0 : i32
    %c0_i32_0 = arith.constant 0 : i32
    %c0_i32_1 = arith.constant 0 : i32
    return %c0_i32, %c0_i32_0 : i32, i32
  }
  func.func @transform_3(%arg0: i32, %arg1: i32) -> (i32, i32) {
    %c0_i32 = arith.constant 0 : i32
    %c0_i32_0 = arith.constant 0 : i32
    %c0_i32_1 = arith.constant 0 : i32
    return %c0_i32, %c0_i32_0 : i32, i32
  }
  func.func @transform_4(%arg0: i32, %arg1: i32) -> (i32, i32) {
    %c0_i32 = arith.constant 0 : i32
    %c0_i32_0 = arith.constant 0 : i32
    %c0_i32_1 = arith.constant 0 : i32
    return %c0_i32, %c0_i32_0 : i32, i32
  }
  func.func @transform_5(%arg0: i32, %arg1: i32) -> (i32, i32, i32) {
    %c0_i32 = arith.constant 0 : i32
    %c0_i32_0 = arith.constant 0 : i32
    return %arg0, %c0_i32, %arg1 : i32, i32, i32
  }
}

</mosaic_0001>

<bundles_post_ra>
// kernel: tpu_custom_call.1
= control target key start
LH: loop header
LB: loop body
LE: loop exit
PB: predicated region body
PF: predicated region fallthrough
CT: control target
= control target key end

     0   :  { %10 = vsyncpa [#allocation3], 0  ;;  %s1337_s0 = inlined_call_operand.hbm [shape: f32[2,64,256], index: 0, kind: input, shape index: {}]   ;;  %s1338_s1 = inlined_call_operand.vmem [shape: bf16[16,64], index: 1, kind: input, shape index: {}]   ;;  %s1339_s2 = inlined_call_operand.vmem [shape: f32[16,1], index: 2, kind: input, shape index: {}]   ;;  %s1340_s3 = inlined_call_operand.vmem [shape: bf16[64,16], index: 3, kind: input, shape index: {}]   ;;  %s1341_s4 = inlined_call_operand.vmem [shape: f32[64,1], index: 4, kind: input, shape index: {}]   ;;  %s1342_s5 = inlined_call_operand.hbm [shape: f32[2,64,256], index: 5, kind: output, shape index: {}]  }
   0x1   :  { %12 = vsyncpa [#allocation3 + $0x1], 0 }
   0x2   :  { %13 = vsyncpa [#allocation4], 0 }
   0x3   :  { %15 = vsyncpa [#allocation4 + $0x1], 0  ;;  %s1069_s18 = smov 0   ;;  %s1071_s19 = smov 0  }
   0x4   :  { %s1073_s20 = smov 0   ;;  %s1075_s21 = smov 0  }
   0x5   :  { %s1077_s22 = smov 0   ;;  %s1079_s23 = smov 0  }
   0x6 LB: > { %s737_s24 = sadd.s32 4294967295, %s1030_s23   ;;  %s738_s25 = sadd.s32 4294967294, %s1030_s23   ;;  %s1030_s23 = sphi %s1079_s23, %s21_s23   ;;  %s1026_s22 = sphi %s1077_s22, %s1357_s22   ;;  %s1022_s21 = sphi %s1075_s21, %s1356_s21   ;;  %s1018_s20 = sphi %s1073_s20, %s1355_s20   ;;  %s1014_s19 = sphi %s1071_s19, %s1354_s19   ;;  %s1010_s18 = sphi %s1069_s18, %s1353_s18  }
   0x7   : > { %s33_s26 = sadd.s32 1, %s1026_s22  ;;  %s42_s27 = sadd.s32 1, %s1018_s20 }
   0x8   : > { %p35_p0 = scmp.ge.s32.totalorder %s33_s26, 2  ;;  %p49_p1 = scmp.ne.s32.totalorder %s1018_s20, %s1014_s19 }
   0x9   : > { %p50_p2 = scmp.eq.s32.totalorder %s1030_s23, 0  ;;  %p55_p3 = scmp.ne.s32.totalorder %s1014_s19, %s1010_s18 }
   0xa   : > { %s1359_s26 = smov (%p35_p0, %s33_s26), 0  ;;  %p56_p5 = scmp.eq.s32.totalorder %s737_s24, 0 }
   0xb   : > { %p1110_p4 = por %p50_p2, %p49_p1  ;;  %s37_s29 = ssub.s32 %s1026_s22, %s1359_s26 }
   0xc   : > { %p165_p6 = scmp.eq.s32.totalorder %s737_s24, 1  ;;  %p40_p7 = scmp.eq.s32.totalorder %s37_s29, 0 }
   0xd   : > { %p1116_p8 = por %p56_p5, %p55_p3  ;;  %p171_p10 = scmp.eq.s32.totalorder %s738_s25, 1 }
   0xe   : > { %p1120_p9 = por %p165_p6, %p49_p1  ;;  %p792_p13 = scmp.lt.s32.totalorder %s1030_s23, 2 }
   0xf   : > { %s1125_s7 = scalar_select %p40_p7, %s1018_s20, %s42_s27  }
  0x10   : > { %s1346_s6 = scalar_select %p1120_p9, 1, 0 }
  0x11   : > { %p1127_p11 = por %p171_p10, %p55_p3  ;;  %s203_s9 = sand.u32 1, %s1018_s20  }
  0x12   : > { %s741_s10 = sshll.u32 %s203_s9, 7  ;;  %s778_s11 = sshll.u32 %s1026_s22, 11 }
  0x13   : > { %s1347_s8 = scalar_select %p1127_p11, 1, 0 }
  0x14   : > { %s1138_s14 = scalar_lea.hbm %s1337_s0, %s778_s11  ;;  %s207_s15 = scalar_lea.vmem [#allocation2], %s741_s10 }
  0x15   : > { %s216_s16 = sshll.u32 %s207_s15, 4  ;;  %p1144_p0 = pnand %p792_p13, %p1110_p4  ;;  %s1140_s16 = int_to_ptr.vmem [resolvable:$true] %s216_s16 }
  0x16   : > { %s1149_s24 = scalar_lea.sflag [#allocation3], %s203_s9  ;;  %s918_s25 = scalar_lea.hbm %s1138_s14, 2048 }
  0x17   : > { %p919_p2 = scmp.ne.s32.totalorder %s1138_s14, %s918_s25  ;;  %p920_p3 = pneg %p1144_p0 }
  0x18   : > { %s923_s28 = scalar_lea.hbm %s1337_s0, 4096  ;;  %p924_p4 = scmp.lt.u32.totalorder %s1138_s14, %s1337_s0 }
  0x19   : > { %p921_p5 = pnand %p920_p3, %p919_p2  ;;  %p925_p7 = scmp.lt.u32.totalorder %s923_s28, %s918_s25 }
  0x1a   : > { %p927_p13 = scmp.lt.u32.totalorder %s918_s25, %s1138_s14 }
  0x1b   : > { %p922_p6 = pneg %p921_p5  ;;  %p926_p10 = por %p925_p7, %p924_p4 }
  0x1d   : > { %p928_p12 = por %p927_p13, %p926_p10 }
  0x1f   : > { %p929_p1 = pnand %p928_p12, %p922_p6 }
  0x21   : > { %932 = shalt.err (!%p929_p1)
}
  0x22   : > { %s933_s9 = scalar_lea.vmem %s1140_s16, 2048  ;;  %s1032_s12 = smov [#allocation2]  }
  0x23   : > { %p934_p2 = scmp.ne.s32.totalorder %s1140_s16, %s933_s9  ;;  %s938_s13 = sshll.u32 %s1032_s12, 4  ;;  %s939_s13 = int_to_ptr.vmem [resolvable:$false] %s938_s13 }
  0x24   : > { %s940_s15 = scalar_lea.vmem %s939_s13, 4096  ;;  %p941_p9 = scmp.lt.s32.totalorder %s1140_s16, %s939_s13 }
  0x25   : > { %p936_p5 = pnand %p934_p2, %p920_p3  ;;  %p942_p4 = scmp.lt.s32.totalorder %s940_s15, %s933_s9 }
  0x27   : > { %p937_p11 = pneg %p936_p5  ;;  %p943_p7 = por %p942_p4, %p941_p9 }
  0x29   : > { %p944_p10 = pnand %p943_p7, %p937_p11 }
  0x2b   : > { %947 = shalt.err (!%p944_p10)
}
  0x2c   : > { %s1033_s25 = smov 256   ;;  %s1034_s27 = smov 16  }
  0x2d   : > { %787 = dma.hbm_to_vmem [thread:$0]  (!%p1144_p0), %s1138_s14, 2048, %s1140_s16, %s1149_s24, %s1033_s25, %s1033_s25, %s1034_s27  }
  0x2e   : > { %p224_p12 = scmp.lt.s32.totalorder %s1030_s23, 3  ;;  %p1349_p1 = scmp.ge.s32.totalorder %s1030_s23, 1 }
  0x30   : > { %p225_p3 = pnand %p1349_p1, %p224_p12 }
  0x31   : > { %s1181_s29 = sand.u32 (!%p225_p3), 1, %s1014_s19  }
  0x32   : > { %228 = sbr.rel (%p225_p3) target bundleno = 585 (0x249), region = 40  ;;  %s745_s28 = sshll.u32 (!%p225_p3), %s1181_s29, 7 }
  0x33   : > { %s231_s10 = scalar_lea.sflag (!%p225_p3), [#allocation3], %s1181_s29  ;;  %s1187_s11 = scalar_lea.vmem (!%p225_p3), [#allocation2], %s745_s28 }
  0x39   : > { %1001 = dma.done.wait (%p1116_p8), %s231_s10, 2048  }
  0x3a   : > { %1003 = vsyncadd (%p1116_p8), %s231_s10, 4294965248  ;;  %v1035_v0 = vmov 0   ;;  %v285_v1 = vld [vmem:[%s1187_s11 + $0x8] sm:$0xff]  ;;  %v287_v2 = vld [vmem:[%s1187_s11 + $0x18] sm:$0xff]  ;;  %vm323_vm0 = vcmask 523264   ;;  %vm436_vm1 = vcmask 130048  }
  0x3b   : > { %359 = vmatprep.mubr.bf16.mxu0 %v1035_v0  ;;  %847 = vset.pattern.permute.xlu0 %v1035_v0  ;;  %v284_v3 = vld [vmem:[%s1187_s11] sm:$0xff]  ;;  %v301_v4 = vpack.c.bf16 %v287_v2, %v285_v1  ;;  %v286_v5 = vld [vmem:[%s1187_s11 + $0x10] sm:$0xff]  ;;  %v289_v6 = vld [vmem:[%s1187_s11 + $0x28] sm:$0xff]  ;;  %s1263_s24 = scalar_lea.vmem [#allocation5], %s745_s28  ;;  %s779_s28 = sshll.u32 %s1022_s21, 11 }
  0x3c   : > { %481 = vmatprep.mubr.bf16.mxu1 %v1035_v0  ;;  %848 = vset.pattern.permute.xlu1 %v1035_v0  ;;  %v291_v7 = vld [vmem:[%s1187_s11 + $0x38] sm:$0xff]  ;;  %v300_v8 = vpack.c.bf16 %v286_v5, %v284_v3  ;;  %v288_v10 = vld [vmem:[%s1187_s11 + $0x20] sm:$0xff]  ;;  %v290_v11 = vld [vmem:[%s1187_s11 + $0x30] sm:$0xff]  ;;  %s650_s9 = sshll.u32 %s1263_s24, 4  ;;  %s1283_s15 = scalar_lea.hbm %s1342_s5, %s779_s28  ;;  %s1285_s9 = int_to_ptr.vmem [resolvable:$true] %s650_s9 }
  0x3d   : > { %v303_v9 = vpack.c.bf16 %v291_v7, %v289_v6  ;;  %v293_v12 = vld [vmem:[%s1187_s11 + $0x48] sm:$0xff]  ;;  %327 = vmatprep.subr.bf16.mxu0 %v301_v4  ;;  %v295_v13 = vld [vmem:[%s1187_s11 + $0x58] sm:$0xff]  ;;  %v302_v14 = vpack.c.bf16 %v290_v11, %v288_v10  ;;  %v292_v15 = vld [vmem:[%s1187_s11 + $0x40] sm:$0xff]  ;;  %s635_s21 = scalar_lea.sflag [#allocation4], %s1181_s29  ;;  %s948_s25 = scalar_lea.vmem %s1285_s9, 2048 }
  0x3e   : > { %328 = vmatpush1.bf16.msra.mxu0 %v300_v8  ;;  %v305_v16 = vpack.c.bf16 %v295_v13, %v293_v12  ;;  %v294_v17 = vld [vmem:[%s1187_s11 + $0x50] sm:$0xff]  ;;  %v297_v18 = vld [vmem:[%s1187_s11 + $0x68] sm:$0xff]  ;;  %v299_v19 = vld [vmem:[%s1187_s11 + $0x78] sm:$0xff]  ;;  %p949_p8 = scmp.ne.s32.totalorder %s1285_s9, %s948_s25  ;;  %p1350_p9 = scmp.ne.s32.totalorder %s1346_s6, 0 }
  0x3f   : > { %329 = vmatprep.subr.bf16.mxu0 %v303_v9  ;;  %v266_v20 = vld [vmem:[%s1339_s2] sm:$0xff]  ;;  %v298_v22 = vld [vmem:[%s1187_s11 + $0x70] sm:$0xff]  ;;  %v267_v23 = vld [vmem:[%s1339_s2 + $0x8] sm:$0xff]  ;;  %v304_v24 = vpack.c.bf16 %v294_v17, %v292_v15  ;;  %v307_v25 = vpack.c.bf16 %v299_v19, %v297_v18  ;;  %s1036_s27 = smov [#allocation5]  }
  0x40   : > { %v296_v21 = vld [vmem:[%s1187_s11 + $0x60] sm:$0xff]  ;;  %310 = vperm.xlu0 %847, %v266_v20   ;;  %v278_v27 = vld [vmem:[%s1341_s4 + $0x10] sm:$0xff]  ;;  %v277_v32 = vld [vmem:[%s1341_s4 + $0x8] sm:$0xff]  ;;  %p950_p11 = pnand %p949_p8, %p1350_p9  ;;  %s952_s10 = sshll.u32 %s1036_s27, 4  ;;  %s953_s10 = int_to_ptr.vmem [resolvable:$false] %s952_s10 }
  0x41   : > { %v306_v26 = vpack.c.bf16 %v298_v22, %v296_v21  ;;  %v849_v28 = vld [vmem:[%s1338_s1] sm:$0xff]   ;;  %v282_v30 = vld [vmem:[%s1341_s4 + $0x30] sm:$0xff]  ;;  %v279_v33 = vld [vmem:[%s1341_s4 + $0x18] sm:$0xff]  ;;  %s954_s11 = scalar_lea.vmem %s953_s10, 4096  ;;  %p955_p6 = scmp.lt.s32.totalorder %s1285_s9, %s953_s10 }
  0x42   : > { %330 = vmatpush1.bf16.msra.mxu0 %v302_v14  ;;  %v280_v29 = vld [vmem:[%s1341_s4 + $0x20] sm:$0xff]  ;;  %v281_v34 = vld [vmem:[%s1341_s4 + $0x28] sm:$0xff]  ;;  %v283_v35 = vld [vmem:[%s1341_s4 + $0x38] sm:$0xff]  ;;  %p951_p0 = pneg %p950_p11  ;;  %p956_p13 = scmp.lt.s32.totalorder %s954_s11, %s948_s25 }
  0x43   : > { %331 = vmatprep.subr.bf16.mxu0 %v305_v16  ;;  %v276_v31 = vld [vmem:[%s1341_s4] sm:$0xff]  ;;  %v851_v53 = vld [vmem:[%s1340_s3 + $0x8] sm:$0xff]   ;;  %v852_v54 = vld [vmem:[%s1340_s3 + $0x10] sm:$0xff]  }
  0x44   : > { %315 = vperm.xlu0 %847, %v267_v23   ;;  %378 = vperm.xlu1 %848, %v276_v31   ;;  %v850_v52 = vld [vmem:[%s1340_s3] sm:$0xff]   ;;  %v853_v55 = vld [vmem:[%s1340_s3 + $0x18] sm:$0xff]   ;;  %p957_p2 = por %p956_p13, %p955_p6 }
  0x46   : > { %332 = vmatpush1.bf16.msra.mxu0 %v304_v24  ;;  %p958_p5 = pnand %p957_p2, %p951_p0 }
  0x47   : > { %333 = vmatprep.subr.bf16.mxu0 %v307_v25 }
  0x48   : > { %388 = vperm.xlu0 %847, %v278_v27   ;;  %383 = vperm.xlu1 %848, %v277_v32  }
  0x4a   : > { %334 = vmatpush1.bf16.msra.mxu0 %v306_v26 }
  0x4c   : > { %398 = vperm.xlu0 %847, %v280_v29   ;;  %393 = vperm.xlu1 %848, %v279_v33  }
  0x4d   : > { %748 = vmatmul.mubr.msk.bf16.vlgmr.msra.gmra.mrb[0].mxu0 %vm323_vm0, %v849_v28 }
  0x50   : > { %408 = vperm.xlu0 %847, %v282_v30   ;;  %403 = vperm.xlu1 %848, %v281_v34  }
  0x54   : > { %413 = vperm.xlu1 %848, %v283_v35  }
  0xbf   : > { %v311_v36 = vpop.permute.xlu0 %310 }
  0xc3   : > { %v316_v40 = vpop.permute.xlu0 %315  ;;  %v379_v56 = vpop.permute.xlu1 %378 }
  0xc7   : > { %v384_v60 = vpop.permute.xlu1 %383  ;;  %v389_v6 = vpop.permute.xlu0 %388 }
  0xcb   : > { %v394_v10 = vpop.permute.xlu1 %393  ;;  %v399_v22 = vpop.permute.xlu0 %398 }
  0xcf   : > { %v404_v31 = vpop.permute.xlu1 %403 }
 0x120   : > { %v361_v37 = vpop.f32.mrb[0].mxu0 }
 0x121   : > { %v362_v38 = vadd.f32 %v361_v37, %v311_v36  ;;  %v363_v39 = vpop.f32.mrb[1].mxu0 }
 0x122   : > { %v364_v41 = vadd.f32 %v363_v39, %v311_v36  ;;  %v365_v42 = vpop.f32.mrb[2].mxu0 }
 0x123   : > { %v366_v43 = vadd.f32 %v365_v42, %v316_v40  ;;  %v367_v44 = vpop.f32.mrb[3].mxu0  ;;  %v370_v46 = vmax.f32 %v362_v38, 0.0 }
 0x124   : > { %v368_v45 = vadd.f32 %v367_v44, %v316_v40  ;;  %v371_v48 = vmax.f32 %v364_v41, 0.0  ;;  %v409_v44 = vpop.permute.xlu0 %408 }
 0x125   : > { %v372_v47 = vmax.f32 %v366_v43, 0.0 }
 0x126   : > { %v373_v49 = vmax.f32 %v368_v45, 0.0 }
 0x127   : > { %v374_v50 = vpack.c.bf16 %v372_v47, %v370_v46 }
 0x128   : > { %v375_v51 = vpack.c.bf16 %v373_v49, %v371_v48 }
 0x12a   : > { %449 = vmatprep.subr.bf16.mxu1 %v375_v51 }
 0x12b   : > { %450 = vmatpush1.bf16.msra.mxu1 %v374_v50 }
 0x12e   : > { %753 = vmatmul.mubr.msk.bf16.vlgmr.msra.gmra.mrb[0].mxu1 %vm436_vm1, %v850_v52 }
 0x12f   : > { %491 = vmatprep.mubr.bf16.mxu1 %v1035_v0 }
 0x136   : > { %754 = vmatmul.mubr.msk.bf16.gmra.mrb[4].mxu1 %vm436_vm1, %v851_v53  ;;  %v414_v53 = vpop.permute.xlu1 %413 }
 0x137   : > { %501 = vmatprep.mubr.bf16.mxu1 %v1035_v0 }
 0x13e   : > { %755 = vmatmul.mubr.msk.bf16.gmra.mrb[8].mxu1 %vm436_vm1, %v852_v54 }
 0x13f   : > { %511 = vmatprep.mubr.bf16.mxu1 %v1035_v0 }
 0x146   : > { %756 = vmatmul.mubr.msk.bf16.gmra.mrb[12].mxu1 %vm436_vm1, %v853_v55 }
 0x201   : > { %v483_v57 = vpop.f32.mrb[0].mxu1 }
 0x202   : > { %v484_v58 = vadd.f32 %v483_v57, %v379_v56  ;;  %v485_v59 = vpop.f32.mrb[1].mxu1 }
 0x203   : > { %v486_v61 = vadd.f32 %v485_v59, %v379_v56  ;;  %v487_v62 = vpop.f32.mrb[2].mxu1 }
 0x204   : > { %v757_v63 = vmul.f32 -1.442695, %v484_v58  ;;  %v488_v1 = vadd.f32 %v487_v62, %v384_v60  ;;  %v489_v2 = vpop.f32.mrb[3].mxu1 }
 0x205   : > { %v758_v3 = vmul.f32 -1.442695, %v486_v61  ;;  %v490_v4 = vadd.f32 %v489_v2, %v384_v60 }
 0x206   : > { %854 = vpow2.f32 %v757_v63  ;;  %v759_v5 = vmul.f32 -1.442695, %v488_v1 }
 0x207   : > { %856 = vpow2.f32 %v758_v3  ;;  %v760_v0 = vmul.f32 -1.442695, %v490_v4 }
 0x208   : > { %858 = vpow2.f32 %v759_v5 }
 0x209   : > { %860 = vpow2.f32 %v760_v0  ;;  %v493_v7 = vpop.f32.mrb[4].mxu1 }
 0x20a   : > { %v494_v8 = vadd.f32 %v493_v7, %v389_v6  ;;  %v495_v9 = vpop.f32.mrb[5].mxu1 }
 0x20b   : > { %v496_v11 = vadd.f32 %v495_v9, %v389_v6  ;;  %v497_v12 = vpop.f32.mrb[6].mxu1 }
 0x20c   : > { %v761_v13 = vmul.f32 -1.442695, %v494_v8  ;;  %v498_v14 = vadd.f32 %v497_v12, %v394_v10  ;;  %v499_v15 = vpop.f32.mrb[7].mxu1 }
 0x20d   : > { %v762_v16 = vmul.f32 -1.442695, %v496_v11  ;;  %v500_v17 = vadd.f32 %v499_v15, %v394_v10 }
 0x20e   : > { %862 = vpow2.f32 %v761_v13  ;;  %v763_v18 = vmul.f32 -1.442695, %v498_v14 }
 0x20f   : > { %864 = vpow2.f32 %v762_v16  ;;  %v764_v19 = vmul.f32 -1.442695, %v500_v17 }
 0x210   : > { %v855_v20 = vpop.eup %854  ;;  %866 = vpow2.f32 %v763_v18 }
 0x211   : > { %v857_v21 = vpop.eup %856  ;;  %v570_v23 = vadd.f32 1.0, %v855_v20  ;;  %868 = vpow2.f32 %v764_v19  ;;  %v503_v24 = vpop.f32.mrb[8].mxu1 }
 0x212   : > { %v859_v25 = vpop.eup %858  ;;  %v571_v26 = vadd.f32 1.0, %v857_v21  ;;  %v504_v27 = vadd.f32 %v503_v24, %v399_v22  ;;  %v505_v28 = vpop.f32.mrb[9].mxu1 }
 0x213   : > { %v861_v29 = vpop.eup %860  ;;  %870 = vrcp.f32 %v570_v23  ;;  %v572_v30 = vadd.f32 1.0, %v859_v25  ;;  %v506_v32 = vadd.f32 %v505_v28, %v399_v22  ;;  %v507_v33 = vpop.f32.mrb[10].mxu1 }
 0x214   : > { %872 = vrcp.f32 %v571_v26  ;;  %v573_v34 = vadd.f32 1.0, %v861_v29  ;;  %v765_v35 = vmul.f32 -1.442695, %v504_v27  ;;  %v508_v36 = vadd.f32 %v507_v33, %v404_v31  ;;  %v509_v37 = vpop.f32.mrb[11].mxu1 }
 0x215   : > { %874 = vrcp.f32 %v572_v30  ;;  %v766_v38 = vmul.f32 -1.442695, %v506_v32  ;;  %v510_v39 = vadd.f32 %v509_v37, %v404_v31 }
 0x216   : > { %876 = vrcp.f32 %v573_v34  ;;  %v767_v40 = vmul.f32 -1.442695, %v508_v36 }
 0x217   : > { %878 = vpow2.f32 %v765_v35  ;;  %v768_v41 = vmul.f32 -1.442695, %v510_v39 }
 0x218   : > { %v863_v42 = vpop.eup %862  ;;  %880 = vpow2.f32 %v766_v38 }
 0x219   : > { %v865_v43 = vpop.eup %864  ;;  %v574_v45 = vadd.f32 1.0, %v863_v42  ;;  %882 = vpow2.f32 %v767_v40  ;;  %v513_v46 = vpop.f32.mrb[12].mxu1 }
 0x21a   : > { %v867_v47 = vpop.eup %866  ;;  %v575_v48 = vadd.f32 1.0, %v865_v43  ;;  %884 = vpow2.f32 %v768_v41  ;;  %v514_v49 = vadd.f32 %v513_v46, %v409_v44  ;;  %v515_v50 = vpop.f32.mrb[13].mxu1 }
 0x21b   : > { %v869_v51 = vpop.eup %868  ;;  %886 = vrcp.f32 %v574_v45  ;;  %v576_v52 = vadd.f32 1.0, %v867_v47  ;;  %v516_v54 = vadd.f32 %v515_v50, %v409_v44  ;;  %v517_v55 = vpop.f32.mrb[14].mxu1 }
 0x21c   : > { %888 = vrcp.f32 %v575_v48  ;;  %v577_v56 = vadd.f32 1.0, %v869_v51  ;;  %v769_v57 = vmul.f32 -1.442695, %v514_v49  ;;  %v518_v58 = vadd.f32 %v517_v55, %v414_v53  ;;  %v519_v59 = vpop.f32.mrb[15].mxu1 }
 0x21d   : > { %v871_v60 = vpop.eup %870  ;;  %890 = vrcp.f32 %v576_v52  ;;  %v770_v61 = vmul.f32 -1.442695, %v516_v54  ;;  %v520_v62 = vadd.f32 %v519_v59, %v414_v53 }
 0x21e   : > { %v873_v63 = vpop.eup %872  ;;  %618 = vst [vmem:[%s1263_s24] sm:$0xff] %v871_v60  ;;  %892 = vrcp.f32 %v577_v56  ;;  %v771_v1 = vmul.f32 -1.442695, %v518_v58 }
 0x21f   : > { %v875_v2 = vpop.eup %874  ;;  %619 = vst [vmem:[%s1263_s24 + $0x8] sm:$0xff] %v873_v63  ;;  %894 = vpow2.f32 %v769_v57  ;;  %v772_v3 = vmul.f32 -1.442695, %v520_v62 }
 0x220   : > { %v877_v4 = vpop.eup %876  ;;  %620 = vst [vmem:[%s1263_s24 + $0x10] sm:$0xff] %v875_v2  ;;  %896 = vpow2.f32 %v770_v61 }
 0x221   : > { %v879_v5 = vpop.eup %878  ;;  %621 = vst [vmem:[%s1263_s24 + $0x18] sm:$0xff] %v877_v4  ;;  %898 = vpow2.f32 %v771_v1 }
 0x222   : > { %v881_v0 = vpop.eup %880  ;;  %v578_v6 = vadd.f32 1.0, %v879_v5  ;;  %900 = vpow2.f32 %v772_v3 }
 0x223   : > { %v883_v7 = vpop.eup %882  ;;  %v579_v8 = vadd.f32 1.0, %v881_v0 }
 0x224   : > { %v885_v9 = vpop.eup %884  ;;  %902 = vrcp.f32 %v578_v6  ;;  %v580_v10 = vadd.f32 1.0, %v883_v7 }
 0x225   : > { %v887_v11 = vpop.eup %886  ;;  %904 = vrcp.f32 %v579_v8  ;;  %v581_v12 = vadd.f32 1.0, %v885_v9 }
 0x226   : > { %v889_v13 = vpop.eup %888  ;;  %622 = vst [vmem:[%s1263_s24 + $0x20] sm:$0xff] %v887_v11  ;;  %906 = vrcp.f32 %v580_v10 }
 0x227   : > { %v891_v14 = vpop.eup %890  ;;  %623 = vst [vmem:[%s1263_s24 + $0x28] sm:$0xff] %v889_v13  ;;  %908 = vrcp.f32 %v581_v12 }
 0x228   : > { %v893_v15 = vpop.eup %892  ;;  %624 = vst [vmem:[%s1263_s24 + $0x30] sm:$0xff] %v891_v14 }
 0x229   : > { %v895_v16 = vpop.eup %894  ;;  %625 = vst [vmem:[%s1263_s24 + $0x38] sm:$0xff] %v893_v15 }
 0x22a   : > { %v897_v17 = vpop.eup %896  ;;  %v582_v18 = vadd.f32 1.0, %v895_v16 }
 0x22b   : > { %v899_v19 = vpop.eup %898  ;;  %v583_v20 = vadd.f32 1.0, %v897_v17 }
 0x22c   : > { %v901_v21 = vpop.eup %900  ;;  %910 = vrcp.f32 %v582_v18  ;;  %v584_v22 = vadd.f32 1.0, %v899_v19 }
 0x22d   : > { %912 = vrcp.f32 %v583_v20  ;;  %v585_v23 = vadd.f32 1.0, %v901_v21 }
 0x22e   : > { %v903_v24 = vpop.eup %902  ;;  %914 = vrcp.f32 %v584_v22 }
 0x22f   : > { %v905_v25 = vpop.eup %904  ;;  %626 = vst [vmem:[%s1263_s24 + $0x40] sm:$0xff] %v903_v24  ;;  %916 = vrcp.f32 %v585_v23 }
 0x230   : > { %v907_v26 = vpop.eup %906  ;;  %627 = vst [vmem:[%s1263_s24 + $0x48] sm:$0xff] %v905_v25 }
 0x231   : > { %v909_v27 = vpop.eup %908  ;;  %628 = vst [vmem:[%s1263_s24 + $0x50] sm:$0xff] %v907_v26 }
 0x232   : > { %629 = vst [vmem:[%s1263_s24 + $0x58] sm:$0xff] %v909_v27 }
 0x236   : > { %v911_v28 = vpop.eup %910 }
 0x237   : > { %v913_v29 = vpop.eup %912  ;;  %630 = vst [vmem:[%s1263_s24 + $0x60] sm:$0xff] %v911_v28 }
 0x238   : > { %v915_v30 = vpop.eup %914  ;;  %631 = vst [vmem:[%s1263_s24 + $0x68] sm:$0xff] %v913_v29 }
 0x239   : > { %v917_v31 = vpop.eup %916  ;;  %632 = vst [vmem:[%s1263_s24 + $0x70] sm:$0xff] %v915_v30 }
 0x23a   : > { %633 = vst [vmem:[%s1263_s24 + $0x78] sm:$0xff] %v917_v31 }
 0x23b   : > { %961 = shalt.err (!%p958_p5)
}
 0x23c   : > { %s962_s30 = scalar_lea.hbm %s1283_s15, 2048  ;;  %s966_s17 = scalar_lea.hbm %s1342_s5, 4096 }
 0x23d   : > { %p963_p4 = scmp.ne.s32.totalorder %s1283_s15, %s962_s30  ;;  %p967_p12 = scmp.lt.u32.totalorder %s1283_s15, %s1342_s5 }
 0x23e   : > { %p968_p1 = scmp.lt.u32.totalorder %s966_s17, %s962_s30  ;;  %p970_p8 = scmp.lt.u32.totalorder %s962_s30, %s1283_s15 }
 0x23f   : > { %p964_p7 = pnand %p963_p4, %p1350_p9 }
 0x240   : > { %p969_p3 = por %p968_p1, %p967_p12 }
 0x241   : > { %p965_p10 = pneg %p964_p7 }
 0x242   : > { %p971_p11 = por %p970_p8, %p969_p3 }
 0x244   : > { %p972_p0 = pnand %p971_p11, %p965_p10 }
 0x246   : > { %975 = shalt.err (!%p972_p0)
}
 0x247   : > { %s1037_s12 = smov 256   ;;  %s1038_s13 = smov 16  }
 0x248   : > { %782 = dma.vmem_to_hbm [thread:$0]  (%p1350_p9), %s1285_s9, 2048, %s1283_s15, %s635_s21, %s1037_s12, %s1037_s12, %s1038_s13  }
 0x249 PF: > { %s665_s25 = sand.u32 1, %s1010_s18   ;;  %p1351_p6 = scmp.ne.s32.totalorder %s1347_s8, 0 }
 0x24a   : > { %p1352_p13 = scmp.ge.s32.totalorder %s1030_s23, 2  ;;  %s666_s27 = scalar_lea.sflag [#allocation4], %s665_s25 }
 0x24c   : > { %p789_p2 = pnand %p1352_p13, %p1351_p6 }
 0x24e   : > { %1005 = dma.done.wait (!%p789_p2), %s666_s27, 2048  }
 0x24f   : > { %1007 = vsyncadd (!%p789_p2), %s666_s27, 4294965248  ;;  %s21_s23 = sadd.s32 1, %s1030_s23   ;;  %s1353_s18 = smov %s1014_s19 }
 0x250   : > { %p18_p5 = scmp.ge.s32.totalorder %s21_s23, 4   ;;  %s1354_s19 = smov %s1018_s20 }
 0x251   : > { %s1355_s20 = smov %s1125_s7  ;;  %s1356_s21 = smov %s1026_s22 }
 0x252   : > { %s1357_s22 = smov %s1359_s26  ;;  %20 = sbr.rel (!%p18_p5) target bundleno = 6 (0x6), region = 85 }
 0x259   :  { %671 = vsyncpa [#allocation3], 1 }
 0x25a   :  { %673 = vsyncpa [#allocation3 + $0x1], 1 }
 0x25b   :  { %674 = vsyncpa [#allocation4], 1 }
 0x25c   :  { %676 = vsyncpa [#allocation4 + $0x1], 1 }

</bundles_post_ra>
